<compile_context>
chip_gen: v5e
topology: v5e:2x2
jax: 0.10.0
libtpu: 0.0.40
codegen_flags: <defaults>
</compile_context>

<pallas_src>
import jax
import jax.numpy as jnp
from jax.experimental import pallas as pl
from jax.experimental.pallas import tpu as pltpu


DIMS = [784, 128, 64, 12, 3]   # encoder MLP layer widths
H3_PAD = 128                   # pad the 12-wide hidden layer to a full vreg lane width
TILE_B_MAX = 1024              # batch tile cap (sweet spot for mem-bound tiling; keeps
                               # >=2 grid tiles on v7x for realistic batch sizes)


def _round_up(x, m):
    return ((x + m - 1) // m) * m


# -----------------------------------------------------------------------------
# Kernel: fused 4-layer MLP encoder (Linear+ReLU x3, Linear), bf16 MXU / f32 acc
# -----------------------------------------------------------------------------
def _encoder_kernel(
    x_ref,                      # (tile_b, 784) bf16
    w1_ref, b1_ref,
    w2_ref, b2_ref,
    w3_ref, b3_ref,
    w4_ref, b4_ref,
    o_ref,                      # (tile_b, 3) f32
):
    # bf16 operands into the MXU, f32 accumulation, f32 bias/ReLU
    # (v5e VPU has no bf16 ALU, so keeping the elementwise path f32 is free).
    x = x_ref[...]

    h = jnp.dot(x, w1_ref[...], preferred_element_type=jnp.float32) + b1_ref[...]
    h = jnp.maximum(h, 0.0)

    h = jnp.dot(h.astype(jnp.bfloat16), w2_ref[...],
                preferred_element_type=jnp.float32) + b2_ref[...]
    h = jnp.maximum(h, 0.0)

    h = jnp.dot(h.astype(jnp.bfloat16), w3_ref[...],
                preferred_element_type=jnp.float32) + b3_ref[...]
    h = jnp.maximum(h, 0.0)     # padded lanes stay exactly zero through ReLU

    h = jnp.dot(h.astype(jnp.bfloat16), w4_ref[...],
                preferred_element_type=jnp.float32) + b4_ref[...]

    o_ref[...] = h.astype(o_ref.dtype)   # (tile_b, 3) store (masked vst, hidden under x DMA)


# -----------------------------------------------------------------------------
# Parameter prep: bf16 weights, zero-pad the 12-wide hidden layer to 128 lanes
# -----------------------------------------------------------------------------
def prepare_params(params):
    pad3 = H3_PAD - DIMS[3]
    p = {
        "w1": params["w1"].astype(jnp.bfloat16),                  # (784, 128)
        "b1": params["b1"].astype(jnp.float32),                   # (1, 128)
        "w2": params["w2"].astype(jnp.bfloat16),                  # (128, 64)
        "b2": params["b2"].astype(jnp.float32),                   # (1, 64)
        # layer 3: pad output lanes 12 -> 128 (zeros)
        "w3": jnp.pad(params["w3"].astype(jnp.bfloat16), ((0, 0), (0, pad3))),   # (64, 128)
        "b3": jnp.pad(params["b3"].astype(jnp.float32), ((0, 0), (0, pad3))),    # (1, 128)
        # layer 4: pad input rows 12 -> 128 (zeros); keep true 3-wide output
        "w4": jnp.pad(params["w4"].astype(jnp.bfloat16), ((0, pad3), (0, 0))),   # (128, 3)
        "b4": params["b4"].astype(jnp.float32),                   # (1, 3)
    }
    return p


def _resident_spec(arr):
    # Full-array block with a constant index_map -> loaded once, stays in VMEM.
    return pl.BlockSpec(arr.shape, lambda i: (0, 0))


# -----------------------------------------------------------------------------
# Wrapper
# -----------------------------------------------------------------------------
@jax.jit
def encoder_forward(x, prepped):
    """Fused encoder MLP as a single batch-tiled Pallas kernel.

    x:       (B, 784) float32 (or bfloat16)
    prepped: output of prepare_params()
    returns  (B, 3) float32
    """
    w1, b1 = prepped["w1"], prepped["b1"]
    w2, b2 = prepped["w2"], prepped["b2"]
    w3, b3 = prepped["w3"], prepped["b3"]
    w4, b4 = prepped["w4"], prepped["b4"]

    B, D_in = x.shape
    # Single tile (8-row aligned) for small batches, capped tile for large ones.
    tile_b = min(TILE_B_MAX, _round_up(B, 8))
    n_tiles = pl.cdiv(B, tile_b)

    # Convert directly in front of the pallas_call; allow_input_fusion lets XLA
    # fuse this into the kernel's input DMA (no standalone HBM pass for x).
    x_in = x if x.dtype == jnp.bfloat16 else x.astype(jnp.bfloat16)

    # Advisory cost for XLA scheduling around the custom call.
    flops = 2 * B * sum(DIMS[i] * DIMS[i + 1] for i in range(len(DIMS) - 1))
    bytes_accessed = (
        B * D_in * 2                                       # bf16 x
        + sum(w.size * 2 for w in (w1, w2, w3, w4))        # bf16 weights (resident)
        + sum(b.size * 4 for b in (b1, b2, b3, b4))        # f32 biases
        + B * DIMS[-1] * 4                                 # true (B, 3) f32 out
    )

    out = pl.pallas_call(
        _encoder_kernel,
        out_shape=jax.ShapeDtypeStruct((B, DIMS[-1]), jnp.float32),
        grid=(n_tiles,),
        in_specs=[
            pl.BlockSpec((tile_b, D_in), lambda i: (i, 0)),   # x: tiled over batch
            _resident_spec(w1), _resident_spec(b1),
            _resident_spec(w2), _resident_spec(b2),
            _resident_spec(w3), _resident_spec(b3),
            _resident_spec(w4), _resident_spec(b4),
        ],
        out_specs=pl.BlockSpec((tile_b, DIMS[-1]), lambda i: (i, 0)),
        compiler_params=pltpu.CompilerParams(
            dimension_semantics=("parallel",),               # shard batch tiles across TCs (v7x)
            allow_input_fusion=[True] + [False] * 8,         # fuse f32->bf16 convert into x DMA
        ),
        cost_estimate=pl.CostEstimate(
            flops=int(flops), transcendentals=0, bytes_accessed=int(bytes_accessed)),
    )(x_in, w1, b1, w2, b2, w3, b3, w4, b4)

    return out


# -----------------------------------------------------------------------------
# Deterministic parameter init (PyTorch nn.Linear default: U(-k,k), k=1/sqrt(fan_in))
# -----------------------------------------------------------------------------
def init_params(key):
    params = {}
    keys = jax.random.split(key, 2 * (len(DIMS) - 1))
    for i in range(len(DIMS) - 1):
        fan_in, fan_out = DIMS[i], DIMS[i + 1]
        bound = 1.0 / jnp.sqrt(jnp.float32(fan_in))
        wk, bk = keys[2 * i], keys[2 * i + 1]
        # Stored (in, out): y = x @ W + b  (== PyTorch x @ W_pt.T + b)
        params[f"w{i + 1}"] = jax.random.uniform(
            wk, (fan_in, fan_out), jnp.float32, minval=-bound, maxval=bound)
        params[f"b{i + 1}"] = jax.random.uniform(
            bk, (1, fan_out), jnp.float32, minval=-bound, maxval=bound)
    return params


# -----------------------------------------------------------------------------
# Pure-JAX reference (same bf16-operand / f32-accumulate precision as the kernel)
# -----------------------------------------------------------------------------
def encoder_ref(x, params):
    def lin(h, w, b):
        return jnp.dot(h.astype(jnp.bfloat16), w.astype(jnp.bfloat16),
                       preferred_element_type=jnp.float32) + b
    h = jnp.maximum(lin(x, params["w1"], params["b1"]), 0.0)
    h = jnp.maximum(lin(h, params["w2"], params["b2"]), 0.0)
    h = jnp.maximum(lin(h, params["w3"], params["b3"]), 0.0)
    return lin(h, params["w4"], params["b4"])


if __name__ == "__main__":
    key = jax.random.PRNGKey(0)
    pkey, xkey, xkey2 = jax.random.split(key, 3)

    params = init_params(pkey)
    prepped = prepare_params(params)

    # Small batch of flattened 28x28 "images" (MNIST-style input to the encoder).
    B = 8
    x = jax.random.normal(xkey, (B, 784), dtype=jnp.float32)
    out = jax.block_until_ready(encoder_forward(x, prepped))
    ref = encoder_ref(x, params)
    assert out.shape == (B, DIMS[-1]), out.shape
    assert jnp.allclose(out, ref, atol=2e-2, rtol=2e-2), "mismatch vs JAX reference"

    # Ragged batch (B not a multiple of the 8-aligned tile) -> partial boundary
    # block; checks that out-of-range rows never leak into real outputs.
    B2 = 20
    x2 = jax.random.normal(xkey2, (B2, 784), dtype=jnp.float32)
    out2 = jax.block_until_ready(encoder_forward(x2, prepped))
    ref2 = encoder_ref(x2, params)
    assert out2.shape == (B2, DIMS[-1]), out2.shape
    assert jnp.allclose(out2, ref2, atol=2e-2, rtol=2e-2), "ragged-batch mismatch"

    print("KERNEL_OK")
</pallas_src>

<mosaic_0001>
module attributes {stable_mosaic.version = 11 : i64} {
  func.func @_encoder_kernel(%arg0: i32, %arg1: memref<8x784xbf16, #tpu.memory_space<vmem>>, %arg2: memref<784x128xbf16, #tpu.memory_space<vmem>>, %arg3: memref<1x128xf32, #tpu.memory_space<vmem>>, %arg4: memref<128x64xbf16, #tpu.memory_space<vmem>>, %arg5: memref<1x64xf32, #tpu.memory_space<vmem>>, %arg6: memref<64x128xbf16, #tpu.memory_space<vmem>>, %arg7: memref<1x128xf32, #tpu.memory_space<vmem>>, %arg8: memref<128x3xbf16, #tpu.memory_space<vmem>>, %arg9: memref<1x3xf32, #tpu.memory_space<vmem>>, %arg10: memref<8x3xf32, #tpu.memory_space<vmem>>) attributes {dimension_semantics = [#tpu.dimension_semantics<parallel>], iteration_bounds = array<i64: 1>, scalar_prefetch = 0 : i64, scratch_operands = 0 : i64, tpu.core_type = #tpu.core_type<tc>, window_params = [{transform_indices = @transform_0, window_bounds = array<i64: 8, 784>}, {pipeline_mode = #tpu.pipeline_mode<synchronous>, transform_indices = @transform_1, window_bounds = array<i64: 784, 128>}, {pipeline_mode = #tpu.pipeline_mode<synchronous>, transform_indices = @transform_2, window_bounds = array<i64: 1, 128>}, {pipeline_mode = #tpu.pipeline_mode<synchronous>, transform_indices = @transform_3, window_bounds = array<i64: 128, 64>}, {pipeline_mode = #tpu.pipeline_mode<synchronous>, transform_indices = @transform_4, window_bounds = array<i64: 1, 64>}, {pipeline_mode = #tpu.pipeline_mode<synchronous>, transform_indices = @transform_5, window_bounds = array<i64: 64, 128>}, {pipeline_mode = #tpu.pipeline_mode<synchronous>, transform_indices = @transform_6, window_bounds = array<i64: 1, 128>}, {pipeline_mode = #tpu.pipeline_mode<synchronous>, transform_indices = @transform_7, window_bounds = array<i64: 128, 3>}, {pipeline_mode = #tpu.pipeline_mode<synchronous>, transform_indices = @transform_8, window_bounds = array<i64: 1, 3>}, {transform_indices = @transform_9, window_bounds = array<i64: 8, 3>}]} {
    %c0 = arith.constant 0 : index
    %c0_0 = arith.constant 0 : index
    %0 = vector.load %arg1[%c0, %c0_0] : memref<8x784xbf16, #tpu.memory_space<vmem>>, vector<8x784xbf16>
    %c0_1 = arith.constant 0 : index
    %c0_2 = arith.constant 0 : index
    %1 = vector.load %arg2[%c0_1, %c0_2] : memref<784x128xbf16, #tpu.memory_space<vmem>>, vector<784x128xbf16>
    %cst = arith.constant dense<0.000000e+00> : vector<8x128xf32>
    %2 = tpu.matmul %0, %1, %cst {dimension_numbers = #tpu.dot_dimension_numbers<[1], [0], [0], [1], [0, 0, 1, 1], [], []>} : vector<8x784xbf16>, vector<784x128xbf16>, vector<8x128xf32> -> vector<8x128xf32>
    %c0_3 = arith.constant 0 : index
    %c0_4 = arith.constant 0 : index
    %3 = vector.load %arg3[%c0_3, %c0_4] : memref<1x128xf32, #tpu.memory_space<vmem>>, vector<1x128xf32>
    %4 = vector.broadcast %3 : vector<1x128xf32> to vector<8x128xf32>
    %5 = arith.addf %2, %4 : vector<8x128xf32>
    %cst_5 = arith.constant 0.000000e+00 : f32
    %6 = vector.broadcast %cst_5 : f32 to vector<8x128xf32>
    %7 = arith.maximumf %5, %6 : vector<8x128xf32>
    %8 = arith.truncf %7 : vector<8x128xf32> to vector<8x128xbf16>
    %c0_6 = arith.constant 0 : index
    %c0_7 = arith.constant 0 : index
    %9 = vector.load %arg4[%c0_6, %c0_7] : memref<128x64xbf16, #tpu.memory_space<vmem>>, vector<128x64xbf16>
    %cst_8 = arith.constant dense<0.000000e+00> : vector<8x64xf32>
    %10 = tpu.matmul %8, %9, %cst_8 {dimension_numbers = #tpu.dot_dimension_numbers<[1], [0], [0], [1], [0, 0, 1, 1], [], []>} : vector<8x128xbf16>, vector<128x64xbf16>, vector<8x64xf32> -> vector<8x64xf32>
    %c0_9 = arith.constant 0 : index
    %c0_10 = arith.constant 0 : index
    %11 = vector.load %arg5[%c0_9, %c0_10] : memref<1x64xf32, #tpu.memory_space<vmem>>, vector<1x64xf32>
    %12 = vector.broadcast %11 : vector<1x64xf32> to vector<8x64xf32>
    %13 = arith.addf %10, %12 : vector<8x64xf32>
    %cst_11 = arith.constant 0.000000e+00 : f32
    %14 = vector.broadcast %cst_11 : f32 to vector<8x64xf32>
    %15 = arith.maximumf %13, %14 : vector<8x64xf32>
    %16 = arith.truncf %15 : vector<8x64xf32> to vector<8x64xbf16>
    %c0_12 = arith.constant 0 : index
    %c0_13 = arith.constant 0 : index
    %17 = vector.load %arg6[%c0_12, %c0_13] : memref<64x128xbf16, #tpu.memory_space<vmem>>, vector<64x128xbf16>
    %cst_14 = arith.constant dense<0.000000e+00> : vector<8x128xf32>
    %18 = tpu.matmul %16, %17, %cst_14 {dimension_numbers = #tpu.dot_dimension_numbers<[1], [0], [0], [1], [0, 0, 1, 1], [], []>} : vector<8x64xbf16>, vector<64x128xbf16>, vector<8x128xf32> -> vector<8x128xf32>
    %c0_15 = arith.constant 0 : index
    %c0_16 = arith.constant 0 : index
    %19 = vector.load %arg7[%c0_15, %c0_16] : memref<1x128xf32, #tpu.memory_space<vmem>>, vector<1x128xf32>
    %20 = vector.broadcast %19 : vector<1x128xf32> to vector<8x128xf32>
    %21 = arith.addf %18, %20 : vector<8x128xf32>
    %cst_17 = arith.constant 0.000000e+00 : f32
    %22 = vector.broadcast %cst_17 : f32 to vector<8x128xf32>
    %23 = arith.maximumf %21, %22 : vector<8x128xf32>
    %24 = arith.truncf %23 : vector<8x128xf32> to vector<8x128xbf16>
    %c0_18 = arith.constant 0 : index
    %c0_19 = arith.constant 0 : index
    %25 = vector.load %arg8[%c0_18, %c0_19] : memref<128x3xbf16, #tpu.memory_space<vmem>>, vector<128x3xbf16>
    %cst_20 = arith.constant dense<0.000000e+00> : vector<8x3xf32>
    %26 = tpu.matmul %24, %25, %cst_20 {dimension_numbers = #tpu.dot_dimension_numbers<[1], [0], [0], [1], [0, 0, 1, 1], [], []>} : vector<8x128xbf16>, vector<128x3xbf16>, vector<8x3xf32> -> vector<8x3xf32>
    %c0_21 = arith.constant 0 : index
    %c0_22 = arith.constant 0 : index
    %27 = vector.load %arg9[%c0_21, %c0_22] : memref<1x3xf32, #tpu.memory_space<vmem>>, vector<1x3xf32>
    %28 = vector.broadcast %27 : vector<1x3xf32> to vector<8x3xf32>
    %29 = arith.addf %26, %28 : vector<8x3xf32>
    %c0_23 = arith.constant 0 : index
    %c0_24 = arith.constant 0 : index
    %30 = vector.load %arg10[%c0_23, %c0_24] : memref<8x3xf32, #tpu.memory_space<vmem>>, vector<8x3xf32>
    tpu.vector_store %arg10[%c0_23, %c0_24], %29 {strides = array<i32>} : memref<8x3xf32, #tpu.memory_space<vmem>>, vector<8x3xf32>,
    return
  }
  func.func @transform_0(%arg0: i32) -> (i32, i32) {
    %c0_i32 = arith.constant 0 : i32
    %c0_i32_0 = arith.constant 0 : i32
    return %arg0, %c0_i32 : i32, i32
  }
  func.func @transform_1(%arg0: i32) -> (i32, i32) {
    %c0_i32 = arith.constant 0 : i32
    %c0_i32_0 = arith.constant 0 : i32
    %c0_i32_1 = arith.constant 0 : i32
    return %c0_i32, %c0_i32_0 : i32, i32
  }
  func.func @transform_2(%arg0: i32) -> (i32, i32) {
    %c0_i32 = arith.constant 0 : i32
    %c0_i32_0 = arith.constant 0 : i32
    %c0_i32_1 = arith.constant 0 : i32
    return %c0_i32, %c0_i32_0 : i32, i32
  }
  func.func @transform_3(%arg0: i32) -> (i32, i32) {
    %c0_i32 = arith.constant 0 : i32
    %c0_i32_0 = arith.constant 0 : i32
    %c0_i32_1 = arith.constant 0 : i32
    return %c0_i32, %c0_i32_0 : i32, i32
  }
  func.func @transform_4(%arg0: i32) -> (i32, i32) {
    %c0_i32 = arith.constant 0 : i32
    %c0_i32_0 = arith.constant 0 : i32
    %c0_i32_1 = arith.constant 0 : i32
    return %c0_i32, %c0_i32_0 : i32, i32
  }
  func.func @transform_5(%arg0: i32) -> (i32, i32) {
    %c0_i32 = arith.constant 0 : i32
    %c0_i32_0 = arith.constant 0 : i32
    %c0_i32_1 = arith.constant 0 : i32
    return %c0_i32, %c0_i32_0 : i32, i32
  }
  func.func @transform_6(%arg0: i32) -> (i32, i32) {
    %c0_i32 = arith.constant 0 : i32
    %c0_i32_0 = arith.constant 0 : i32
    %c0_i32_1 = arith.constant 0 : i32
    return %c0_i32, %c0_i32_0 : i32, i32
  }
  func.func @transform_7(%arg0: i32) -> (i32, i32) {
    %c0_i32 = arith.constant 0 : i32
    %c0_i32_0 = arith.constant 0 : i32
    %c0_i32_1 = arith.constant 0 : i32
    return %c0_i32, %c0_i32_0 : i32, i32
  }
  func.func @transform_8(%arg0: i32) -> (i32, i32) {
    %c0_i32 = arith.constant 0 : i32
    %c0_i32_0 = arith.constant 0 : i32
    %c0_i32_1 = arith.constant 0 : i32
    return %c0_i32, %c0_i32_0 : i32, i32
  }
  func.func @transform_9(%arg0: i32) -> (i32, i32) {
    %c0_i32 = arith.constant 0 : i32
    %c0_i32_0 = arith.constant 0 : i32
    return %arg0, %c0_i32 : i32, i32
  }
}

</mosaic_0001>

<bundles_post_ra>
// kernel: encoder_forward.2
= control target key start
LH: loop header
LB: loop body
LE: loop exit
PB: predicated region body
PF: predicated region fallthrough
CT: control target
= control target key end

     0   :  { %14 = vsyncpa [#allocation3], 0  ;;  %s1265_s12 = smov [#allocation2]   ;;  %s1266_s14 = smov 64   ;;  %s1425_s0 = inlined_call_operand.hbm [shape: bf16[784,128], index: 0, kind: input, shape index: {}]   ;;  %s1426_s1 = inlined_call_operand.vmem [shape: f32[1,128], index: 1, kind: input, shape index: {}]   ;;  %s1427_s2 = inlined_call_operand.vmem [shape: bf16[128,64], index: 2, kind: input, shape index: {}]   ;;  %s1428_s3 = inlined_call_operand.vmem [shape: f32[1,64], index: 3, kind: input, shape index: {}]   ;;  %s1429_s4 = inlined_call_operand.vmem [shape: bf16[64,128], index: 4, kind: input, shape index: {}]   ;;  %s1430_s5 = inlined_call_operand.vmem [shape: f32[1,128], index: 5, kind: input, shape index: {}]   ;;  %s1431_s6 = inlined_call_operand.vmem [shape: bf16[128,3], index: 6, kind: input, shape index: {}]   ;;  %s1432_s7 = inlined_call_operand.vmem [shape: f32[1,3], index: 7, kind: input, shape index: {}]   ;;  %s1433_s8 = inlined_call_operand.vmem [shape: f32[8,784], index: 8, kind: input, shape index: {}]   ;;  %s1434_s9 = inlined_call_operand.vmem [shape: f32[8,3], index: 9, kind: output, shape index: {}]  }
   0x1   :  { %s21_s11 = sshll.u32 %s1425_s0, 4  ;;  %s23_s13 = sshll.u32 %s1265_s12, 4  ;;  %s22_s11 = int_to_ptr.hbm [resolvable:$true] %s21_s11  ;;  %s24_s13 = int_to_ptr.vmem [resolvable:$true] %s23_s13 }
   0x2   :  { %s1267_s15 = smov 4  }
   0x3   :  { %29 = dma.hbm_to_vmem [thread:$0]  %s22_s11, 6272, %s24_s13, [#allocation3], %s1266_s14, %s1266_s14, %s1267_s15  }
   0x4   :  { %1263 = dma.done.wait [#allocation3], 6272  }
   0x5   :  { %1264 = vsyncadd [#allocation3], 4294961024  ;;  %v1155_v0 = vld [vmem:[#allocation2 + $0x38] sm:$0xff]  ;;  %v1154_v3 = vld [vmem:[#allocation2 + $0x30] sm:$0xff]  ;;  %vm541_vm0 = vcmask 130048   ;;  %vm757_vm1 = vcmask 523264  }
   0x6   :  { %v1163_v1 = vld [vmem:[#allocation2 + $0x78] sm:$0xff]  ;;  %545 = vmatpush.bf16.msra.mxu0 %v1155_v0  ;;  %v1162_v4 = vld [vmem:[#allocation2 + $0x70] sm:$0xff]  ;;  %v1153_v8 = vld [vmem:[#allocation2 + $0x28] sm:$0xff]  ;;  %vm857_vm2 = vcmask 23552  }
   0x7   :  { %v1171_v2 = vld [vmem:[#allocation2 + $0xb8] sm:$0xff]  ;;  %558 = vmatpush.bf16.msra.mxu1 %v1163_v1  ;;  %v1170_v5 = vld [vmem:[#allocation2 + $0xb0] sm:$0xff]  ;;  %v1161_v9 = vld [vmem:[#allocation2 + $0x68] sm:$0xff] }
   0x8   :  { %571 = vmatpush.bf16.msra.mxu2 %v1171_v2  ;;  %v1179_v6 = vld [vmem:[#allocation2 + $0xf8] sm:$0xff]  ;;  %v1178_v7 = vld [vmem:[#allocation2 + $0xf0] sm:$0xff]  ;;  %v1169_v10 = vld [vmem:[#allocation2 + $0xa8] sm:$0xff] }
   0x9   :  { %584 = vmatpush.bf16.msra.mxu3 %v1179_v6  ;;  %v1177_v11 = vld [vmem:[#allocation2 + $0xe8] sm:$0xff]  ;;  %v1152_v12 = vld [vmem:[#allocation2 + $0x20] sm:$0xff]  ;;  %v865_v15 = vld [vmem:[%s1433_s8 + $0x10] sm:$0xff] }
   0xa   :  { %546 = vmatpush.bf16.msra.mxu0 %v1154_v3  ;;  %v1160_v13 = vld [vmem:[#allocation2 + $0x60] sm:$0xff]  ;;  %v866_v16 = vld [vmem:[%s1433_s8 + $0x18] sm:$0xff]  ;;  %v864_v19 = vld [vmem:[%s1433_s8 + $0x8] sm:$0xff] }
   0xb   :  { %559 = vmatpush.bf16.msra.mxu1 %v1162_v4  ;;  %v1168_v14 = vld [vmem:[#allocation2 + $0xa0] sm:$0xff]  ;;  %v1327_v17 = vpack.c.bf16 %v866_v16, %v865_v15  ;;  %v1151_v22 = vld [vmem:[#allocation2 + $0x18] sm:$0xff]  ;;  %v869_v25 = vld [vmem:[%s1433_s8 + $0x30] sm:$0xff] }
   0xc   :  { %572 = vmatpush.bf16.msra.mxu2 %v1170_v5  ;;  %v48_v18 = vld [vmem:[%s1433_s8] sm:$0xff]  ;;  %v1159_v23 = vld [vmem:[#allocation2 + $0x58] sm:$0xff]  ;;  %v112_v27 = vpack.c.bf16 0.0, %v869_v25  ;;  %v1150_v28 = vld [vmem:[#allocation2 + $0x10] sm:$0xff] }
   0xd   :  { %585 = vmatpush.bf16.msra.mxu3 %v1178_v7  ;;  %v1176_v20 = vld [vmem:[#allocation2 + $0xe0] sm:$0xff]  ;;  %v1220_v21 = vpack.c.bf16 %v864_v19, %v48_v18  ;;  %v1167_v24 = vld [vmem:[#allocation2 + $0x98] sm:$0xff]  ;;  %v1158_v29 = vld [vmem:[#allocation2 + $0x50] sm:$0xff]  ;;  %v229_v46 = vunpack.c.l.b16 %v1327_v17  ;;  %v230_v49 = vunpack.c.h.b16 %v1327_v17 }
   0xe   :  { %547 = vmatpush.bf16.msra.mxu0 %v1153_v8  ;;  %v1175_v26 = vld [vmem:[#allocation2 + $0xd8] sm:$0xff]  ;;  %v1166_v30 = vld [vmem:[#allocation2 + $0x90] sm:$0xff]  ;;  %115 = vst [vmem:[#allocation4 + $0x18] sm:$0xf] %v112_v27  ;;  %v1149_v32 = vld [vmem:[#allocation2 + $0x8] sm:$0xff] }
   0xf   :  { %560 = vmatpush.bf16.msra.mxu1 %v1161_v9  ;;  %v1174_v31 = vld [vmem:[#allocation2 + $0xd0] sm:$0xff]  ;;  %v1157_v33 = vld [vmem:[#allocation2 + $0x48] sm:$0xff]  ;;  %v867_v35 = vld [vmem:[%s1433_s8 + $0x20] sm:$0xff]  ;;  %v227_v38 = vunpack.c.l.b16 %v1220_v21  ;;  %v228_v40 = vunpack.c.h.b16 %v1220_v21  ;;  %v236_v54 = vpack.c.b16 %v229_v46, %v229_v46  ;;  %v237_v55 = vpack.c.b16 %v230_v49, %v230_v49 }
  0x10   :  { %573 = vmatpush.bf16.msra.mxu2 %v1169_v10  ;;  %v1165_v34 = vld [vmem:[#allocation2 + $0x88] sm:$0xff]  ;;  %v1148_v41 = vld [vmem:[#allocation2] sm:$0xff]  ;;  %v1187_v43 = vld [vmem:[#allocation2 + $0x138] sm:$0xff] }
  0x11   :  { %586 = vmatpush.bf16.msra.mxu3 %v1177_v11  ;;  %v868_v36 = vld [vmem:[%s1433_s8 + $0x28] sm:$0xff]  ;;  %v1156_v42 = vld [vmem:[#allocation2 + $0x40] sm:$0xff]  ;;  %v1195_v44 = vld [vmem:[#allocation2 + $0x178] sm:$0xff]  ;;  %v234_v47 = vpack.c.b16 %v227_v38, %v227_v38  ;;  %v235_v48 = vpack.c.b16 %v228_v40, %v228_v40 }
  0x12   :  { %548 = vmatpush.bf16.msra.mxu0 %v1152_v12  ;;  %v1344_v37 = vpack.c.bf16 %v868_v36, %v867_v35  ;;  %v1173_v39 = vld [vmem:[#allocation2 + $0xc8] sm:$0xff]  ;;  %v1164_v45 = vld [vmem:[#allocation2 + $0x80] sm:$0xff]  ;;  %v1186_v52 = vld [vmem:[#allocation2 + $0x130] sm:$0xff] }
  0x13   :  { %561 = vmatpush.bf16.msra.mxu1 %v1160_v13  ;;  %v1172_v50 = vld [vmem:[#allocation2 + $0xc0] sm:$0xff]  ;;  %v1194_v53 = vld [vmem:[#allocation2 + $0x170] sm:$0xff]  ;;  %v1185_v56 = vld [vmem:[#allocation2 + $0x128] sm:$0xff] }
  0x14   :  { %574 = vmatpush.bf16.msra.mxu2 %v1168_v14  ;;  %v1196_v51 = vld [vmem:[#allocation2 + $0x180] sm:$0xff]  ;;  %v1193_v57 = vld [vmem:[#allocation2 + $0x168] sm:$0xff]  ;;  %v1183_v61 = vld [vmem:[#allocation2 + $0x118] sm:$0xff]  ;;  %v231_v5 = vunpack.c.l.b16 %v1344_v37  ;;  %v232_v6 = vunpack.c.h.b16 %v1344_v37 }
  0x15   :  { %587 = vmatpush.bf16.msra.mxu3 %v1176_v20  ;;  %v1184_v58 = vld [vmem:[#allocation2 + $0x120] sm:$0xff]  ;;  %v1191_v62 = vld [vmem:[#allocation2 + $0x158] sm:$0xff]  ;;  %v1182_v0 = vld [vmem:[#allocation2 + $0x110] sm:$0xff] }
  0x16   :  { %549 = vmatpush.bf16.msra.mxu0 %v1151_v22  ;;  %v1192_v59 = vld [vmem:[#allocation2 + $0x160] sm:$0xff]  ;;  %v1190_v1 = vld [vmem:[#allocation2 + $0x150] sm:$0xff]  ;;  %v1181_v3 = vld [vmem:[#allocation2 + $0x108] sm:$0xff]  ;;  %v238_v9 = vpack.c.b16 %v231_v5, %v231_v5  ;;  %v239_v10 = vpack.c.b16 %v232_v6, %v232_v6 }
  0x17   :  { %562 = vmatpush.bf16.msra.mxu1 %v1159_v23  ;;  %v120_v60 = vld [vmem:[#allocation4 + $0x18] sm:$0xf]  ;;  %v1189_v4 = vld [vmem:[#allocation2 + $0x148] sm:$0xff]  ;;  %v1204_v11 = vld [vmem:[%s1427_s2 + $0x38] sm:$0xff] }
  0x18   :  { %575 = vmatpush.bf16.msra.mxu2 %v1167_v24  ;;  %v233_v63 = vunpack.c.l.b16 %v120_v60  ;;  %v1180_v7 = vld [vmem:[#allocation2 + $0x100] sm:$0xff]  ;;  %v1203_v12 = vld [vmem:[%s1427_s2 + $0x30] sm:$0xff]  ;;  %v1202_v13 = vld [vmem:[%s1427_s2 + $0x28] sm:$0xff] }
  0x19   :  { %588 = vmatpush.bf16.msra.mxu3 %v1175_v26  ;;  %v1188_v8 = vld [vmem:[#allocation2 + $0x140] sm:$0xff]  ;;  %v1200_v15 = vld [vmem:[%s1427_s2 + $0x18] sm:$0xff]  ;;  %v1199_v16 = vld [vmem:[%s1427_s2 + $0x10] sm:$0xff] }
  0x1a   :  { %550 = vmatpush.bf16.msra.mxu0 %v1150_v28  ;;  %v240_v2 = vpack.c.b16 %v233_v63, %v233_v63  ;;  %v1201_v14 = vld [vmem:[%s1427_s2 + $0x20] sm:$0xff]  ;;  %v1198_v17 = vld [vmem:[%s1427_s2 + $0x8] sm:$0xff]  ;;  %v1208_v23 = vld [vmem:[%s1429_s4 + $0x18] sm:$0xff] }
  0x1b   :  { %563 = vmatpush.bf16.msra.mxu1 %v1158_v29  ;;  %v1197_v20 = vld [vmem:[%s1427_s2] sm:$0xff]  ;;  %v1207_v26 = vld [vmem:[%s1429_s4 + $0x10] sm:$0xff]  ;;  %v1206_v28 = vld [vmem:[%s1429_s4 + $0x8] sm:$0xff] }
  0x1c   :  { %576 = vmatpush.bf16.msra.mxu2 %v1166_v30  ;;  %v1235_v27 = vld [vmem:[%s1426_s1] ss:$0 sm:$0xff]  ;;  %v1214_v49 = vld [vmem:[%s1431_s6 + $0x28] sm:$0xff] }
  0x1d   :  { %589 = vmatpush.bf16.msra.mxu3 %v1174_v31  ;;  %v1205_v46 = vld [vmem:[%s1429_s4] sm:$0xff] }
  0x1e   :  { %551 = vmatpush.bf16.msra.mxu0 %v1149_v32  ;;  %v1209_v60 = vld [vmem:[%s1431_s6] sm:$0xff] }
  0x1f   :  { %564 = vmatpush.bf16.msra.mxu1 %v1157_v33 }
  0x20   :  { %577 = vmatpush.bf16.msra.mxu2 %v1165_v34 }
  0x21   :  { %590 = vmatpush.bf16.msra.mxu3 %v1173_v39 }
  0x22   :  { %552 = vmatpush.bf16.msra.mxu0 %v1148_v41 }
  0x23   :  { %565 = vmatpush.bf16.msra.mxu1 %v1156_v42 }
  0x24   :  { %578 = vmatpush.bf16.msra.mxu2 %v1164_v45 }
  0x25   :  { %553 = vmatmul.bf16.vlgmr.msra.gmra.mxu0 %v234_v47  ;;  %591 = vmatpush.bf16.msra.mxu3 %v1172_v50  ;;  %v1216_v47 = vld [vmem:[%s1431_s6 + $0x38] sm:$0xff]  ;;  %v1213_v50 = vld [vmem:[%s1431_s6 + $0x20] sm:$0xff] }
  0x26   :  { %597 = vmatpush.bf16.msrb.mxu0 %v1187_v43  ;;  %566 = vmatmul.bf16.vlgmr.msra.gmra.mxu1 %v235_v48  ;;  %v1215_v48 = vld [vmem:[%s1431_s6 + $0x30] sm:$0xff] }
  0x27   :  { %610 = vmatpush.bf16.msrb.mxu1 %v1195_v44  ;;  %579 = vmatmul.bf16.vlgmr.msra.gmra.mxu2 %v236_v54 }
  0x28   :  { %630 = vmatpush.bf16.msrb.mxu2 %v1196_v51  ;;  %592 = vmatmul.bf16.vlgmr.msra.gmra.mxu3 %v237_v55  ;;  %v1212_v51 = vld [vmem:[%s1431_s6 + $0x18] sm:$0xff] }
  0x29   :  { %706 = vmatpush.bf16.msrb.mxu3 %v1204_v11 }
  0x2a   :  { %598 = vmatpush.bf16.msrb.mxu0 %v1186_v52  ;;  %v1211_v52 = vld [vmem:[%s1431_s6 + $0x10] sm:$0xff] }
  0x2b   :  { %611 = vmatpush.bf16.msrb.mxu1 %v1194_v53  ;;  %v1236_v53 = vld [vmem:[%s1428_s3] ss:$0 sm:$0xff] }
  0x2c   :  { %765 = vmatpush.bf16.msra.mxu2 %v1208_v23 }
  0x2d   :  { %707 = vmatpush.bf16.msrb.mxu3 %v1203_v12 }
  0x2e   :  { %599 = vmatpush.bf16.msrb.mxu0 %v1185_v56 }
  0x2f   :  { %612 = vmatpush.bf16.msrb.mxu1 %v1193_v57 }
  0x30   :  { %766 = vmatpush.bf16.msra.mxu2 %v1207_v26 }
  0x31   :  { %708 = vmatpush.bf16.msrb.mxu3 %v1202_v13 }
  0x32   :  { %600 = vmatpush.bf16.msrb.mxu0 %v1184_v58 }
  0x33   :  { %613 = vmatpush.bf16.msrb.mxu1 %v1192_v59  ;;  %v1210_v59 = vld [vmem:[%s1431_s6 + $0x8] sm:$0xff] }
  0x34   :  { %767 = vmatpush.bf16.msra.mxu2 %v1206_v28 }
  0x35   :  { %709 = vmatpush.bf16.msrb.mxu3 %v1201_v14 }
  0x36   :  { %601 = vmatpush.bf16.msrb.mxu0 %v1183_v61  ;;  %v1237_v61 = vld [vmem:[%s1430_s5] ss:$0 sm:$0xff] }
  0x37   :  { %614 = vmatpush.bf16.msrb.mxu1 %v1191_v62  ;;  %1066 = vmatmul.msk.bf16.vlgmr.msrb.gmra.mxu2 %vm541_vm0, %v240_v2 }
  0x38   :  { %768 = vmatpush.bf16.msra.mxu2 %v1205_v46 }
  0x39   :  { %710 = vmatpush.bf16.msrb.mxu3 %v1200_v15 }
  0x3a   :  { %602 = vmatpush.bf16.msrb.mxu0 %v1182_v0 }
  0x3b   :  { %615 = vmatpush.bf16.msrb.mxu1 %v1190_v1 }
  0x3d   :  { %711 = vmatpush.bf16.msrb.mxu3 %v1199_v16 }
  0x3e   :  { %603 = vmatpush.bf16.msrb.mxu0 %v1181_v3  ;;  %v1238_v3 = vld [vmem:[%s1432_s7] ss:$0 sm:$0xff] }
  0x3f   :  { %616 = vmatpush.bf16.msrb.mxu1 %v1189_v4 }
  0x41   :  { %712 = vmatpush.bf16.msrb.mxu3 %v1198_v17 }
  0x42   :  { %604 = vmatpush.bf16.msrb.mxu0 %v1180_v7 }
  0x43   :  { %617 = vmatpush.bf16.msrb.mxu1 %v1188_v8 }
  0x45   :  { %605 = vmatmul.bf16.vlgmr.msrb.gmra.mxu0 %v238_v9  ;;  %713 = vmatpush.bf16.msrb.mxu3 %v1197_v20 }
  0x46   :  { %618 = vmatmul.bf16.vlgmr.msrb.gmra.mxu1 %v239_v10  ;;  %844 = vmatpush.bf16.msra.mxu0 %v1216_v47 }
  0x4a   :  { %845 = vmatpush.bf16.msra.mxu0 %v1215_v48 }
  0x4e   :  { %846 = vmatpush.bf16.msra.mxu0 %v1214_v49 }
  0x52   :  { %847 = vmatpush.bf16.msra.mxu0 %v1213_v50 }
  0x56   :  { %848 = vmatpush.bf16.msra.mxu0 %v1212_v51 }
  0x5a   :  { %849 = vmatpush.bf16.msra.mxu0 %v1211_v52 }
  0x5e   :  { %850 = vmatpush.bf16.msra.mxu0 %v1210_v59 }
  0x62   :  { %851 = vmatpush.bf16.msra.mxu0 %v1209_v60 }
  0xa2   :  { %v554_v18 = vpop.f32.mrf.mxu0 }
  0xa3   :  { %v567_v19 = vpop.f32.mrf.mxu1  ;;  %v555_v29 = vadd.f32 %v1235_v27, %v554_v18 }
  0xa5   :  { %v568_v32 = vadd.f32 %v567_v19, %v555_v29 }
  0xaa   :  { %v556_v21 = vpop.f32.mrf.mxu0  ;;  %v580_v24 = vpop.f32.mrf.mxu2 }
  0xab   :  { %v569_v22 = vpop.f32.mrf.mxu1  ;;  %v593_v25 = vpop.f32.mrf.mxu3  ;;  %v581_v33 = vadd.f32 %v580_v24, %v568_v32 }
  0xad   :  { %v594_v35 = vadd.f32 %v593_v25, %v581_v33 }
  0xb2   :  { %v582_v30 = vpop.f32.mrf.mxu2 }
  0xb3   :  { %v595_v31 = vpop.f32.mrf.mxu3 }
  0xba   :  { %v632_v34 = vpop.f32.mrf.mxu2 }
  0xc2   :  { %v606_v36 = vpop.f32.mrf.mxu0  ;;  %v634_v40 = vpop.f32.mrf.mxu2 }
  0xc3   :  { %v619_v37 = vpop.f32.mrf.mxu1  ;;  %v607_v38 = vadd.f32 %v606_v36, %v594_v35 }
  0xc5   :  { %v620_v39 = vadd.f32 %v619_v37, %v607_v38 }
  0xc7   :  { %v633_v41 = vadd.f32 %v632_v34, %v620_v39 }
  0xc9   :  { %v636_v42 = vmax.f32 %v633_v41, 0.0 }
  0xca   :  { %v608_v43 = vpop.f32.mrf.mxu0 }
  0xcb   :  { %v621_v44 = vpop.f32.mrf.mxu1  ;;  %v637_v45 = vpack.c.bf16 %v636_v42, %v636_v42 }
  0xcd   :  { %714 = vmatmul.bf16.vlgmr.msrb.gmra.mxu3 %v637_v45 }
 0x150   :  { %v715_v54 = vpop.f32.mrf.mxu3 }
 0x151   :  { %v716_v55 = vadd.f32 %v1236_v53, %v715_v54 }
 0x153   :  { %v719_v56 = vmax.f32 %v716_v55, 0.0 }
 0x155   :  { %v720_v57 = vpack.c.bf16 %v719_v56, %v719_v56 }
 0x157   :  { %1115 = vmatmul.msk.bf16.vlgmr.msra.gmra.mxu2 %vm757_vm1, %v720_v57 }
 0x158   :  { %v717_v58 = vpop.f32.mrf.mxu3 }
 0x1da   :  { %v770_v62 = vpop.f32.mrf.mxu2 }
 0x1db   :  { %v771_v63 = vadd.f32 %v1237_v61, %v770_v62 }
 0x1dd   :  { %v774_v0 = vmax.f32 %v771_v63, 0.0 }
 0x1df   :  { %v775_v1 = vpack.c.bf16 %v774_v0, %v774_v0 }
 0x1e1   :  { %852 = vmatmul.bf16.vlgmr.msra.gmra.mxu0 %v775_v1 }
 0x1e2   :  { %v772_v2 = vpop.f32.mrf.mxu2 }
 0x25e   :  { %v853_v4 = vpop.f32.mrf.mxu0 }
 0x25f   :  { %v854_v5 = vadd.f32 %v1238_v3, %v853_v4 }
 0x261   :  { %858 = vst.msk [vmem:[%s1434_s9] sm:$0xff] %vm857_vm2, %v854_v5 }
 0x266   :  { %v855_v6 = vpop.f32.mrf.mxu0 }
 0x267   :  { %863 = vsyncpa [#allocation3], 1 }

</bundles_post_ra>
